<compile_context>
chip_gen: v7x
topology: tpu7x:2x2x1
jax: 0.10.0
libtpu: 0.0.40
codegen_flags: <defaults>
</compile_context>

<pallas_src>
import functools
import math

import jax
import jax.numpy as jnp
from jax.experimental import pallas as pl
from jax.experimental.pallas import tpu as pltpu

_LANE = 128


def _ce_kernel(logits_ref, labels_ref, loss_ref, hsum_ref, hcnt_ref, *,
               n_classes, ignore_lb, thresh_val, rows_tile, hw, need_mask):
    # logits_ref: (C, rows_tile, 128) in input dtype
    # labels_ref: (rows_tile, 128) int32
    # loss_ref:   (rows_tile, 128) f32
    # hsum_ref / hcnt_ref: (1, 128) per-block partial hard-loss sum / count
    lbl = labels_ref[...]

    # Running max in the native dtype (exact for bf16; avoids per-class casts
    # on the max pass), cast to f32 once.
    m = logits_ref[0]
    for c in range(1, n_classes):
        m = jnp.maximum(m, logits_ref[c])
    m = m.astype(jnp.float32)

    # exp-sum and one-hot gather of the label logit, in f32 (stable for bf16).
    s = jnp.zeros_like(m)
    picked = jnp.zeros_like(m)
    for c in range(n_classes):
        xc = logits_ref[c].astype(jnp.float32)
        s = s + jnp.exp(xc - m)
        picked = jnp.where(lbl == c, xc, picked)

    lse = jnp.log(s) + m
    valid = lbl != ignore_lb
    # CrossEntropyLoss(reduction='none', ignore_index=...) -> 0 at ignored px
    loss = jnp.where(valid, lse - picked, jnp.float32(0.0))
    loss_ref[...] = loss

    # Fused OHEM hard-branch partial stats: sum/count of loss > -log(thresh).
    hard = loss > jnp.float32(thresh_val)
    if need_mask:
        # Mask pixels that lie beyond the real H*W extent (padded lanes or the
        # out-of-bounds part of a partial edge block, whose reads are garbage).
        r0 = pl.program_id(1) * rows_tile
        rows = jax.lax.broadcasted_iota(jnp.int32, loss.shape, 0) + r0
        cols = jax.lax.broadcasted_iota(jnp.int32, loss.shape, 1)
        hard = jnp.logical_and(hard, rows * _LANE + cols < hw)
    hsum_ref[...] = jnp.sum(jnp.where(hard, loss, jnp.float32(0.0)),
                            axis=0, keepdims=True)
    hcnt_ref[...] = jnp.sum(hard.astype(jnp.int32), axis=0, keepdims=True)


def _pick_rows_tile(n_classes, itemsize, total_rows, batch):
    """Largest row tile whose double-buffered blocks fit a ~20 MiB VMEM budget
    (safe on v5e/v6e/v7x once vmem_limit_bytes is raised), capped at 1024."""
    per_row = _LANE * (n_classes * itemsize + 4 + 4)   # logits + labels + loss
    temps = 3 * _LANE * 4                              # m / s / picked f32
    budget = 20 * 1024 * 1024
    rows = int(budget // (2 * per_row + temps))
    rows = min(rows, 1024)
    if rows >= total_rows:
        if batch == 1 and total_rows > 32:
            # Keep >= 2 grid steps so both v7x TensorCores receive work.
            rows = -(-total_rows // 2)
            rows = -(-rows // 16) * 16
            return min(rows, total_rows)
        return total_rows
    return max(16, (rows // 16) * 16)


def per_pixel_ce_ohem(logits_nchw, labels_nhw, *, thresh_val, ignore_lb=255):
    """Per-pixel CE with ignore_index plus fused hard-branch statistics.

    Returns (loss_flat, sum_hard, n_hard) where loss_flat has N*HWp >= N*H*W
    entries (any extra entries are exactly 0 and cannot perturb a top-k of
    non-negative CE losses), sum_hard = sum of losses > thresh_val over real
    pixels, n_hard = their count (int32).
    """
    N, C, H, W = logits_nchw.shape
    HW = H * W

    # Free reshapes only in the common case (H*W a multiple of 128).
    logits = logits_nchw.reshape(N, C, HW)
    labels = labels_nhw.reshape(N, HW).astype(jnp.int32)

    if HW % _LANE == 0:
        HWp = HW
    else:
        # Ragged tail: pad to a lane multiple (padded labels = ignore -> 0
        # loss; the in-kernel mask keeps them out of the hard-branch stats).
        HWp = pl.cdiv(HW, _LANE) * _LANE
        logits = jnp.pad(logits, ((0, 0), (0, 0), (0, HWp - HW)))
        labels = jnp.pad(labels, ((0, 0), (0, HWp - HW)),
                         constant_values=ignore_lb)
    R = HWp // _LANE

    rows_tile = _pick_rows_tile(C, logits.dtype.itemsize, R, N)
    num_rb = pl.cdiv(R, rows_tile)
    need_mask = (HWp != HW) or (R % rows_tile != 0)

    logits4 = logits.reshape(N, C, R, _LANE)       # free reshape
    labels3 = labels.reshape(N, R, _LANE)          # free reshape

    kernel = functools.partial(
        _ce_kernel, n_classes=C, ignore_lb=ignore_lb, thresh_val=thresh_val,
        rows_tile=rows_tile, hw=HW, need_mask=need_mask)

    total_px = N * HWp
    cost = pl.CostEstimate(
        flops=int((6 * C + 10) * total_px),
        transcendentals=int((C + 1) * total_px),
        bytes_accessed=int((C * logits4.dtype.itemsize + 8) * total_px),
    )

    loss, hsum, hcnt = pl.pallas_call(
        kernel,
        out_shape=(
            jax.ShapeDtypeStruct((N, R, _LANE), jnp.float32),
            jax.ShapeDtypeStruct((N, num_rb, 1, _LANE), jnp.float32),
            jax.ShapeDtypeStruct((N, num_rb, 1, _LANE), jnp.int32),
        ),
        grid=(N, num_rb),
        in_specs=[
            # logits: squeeze batch, keep full class dim, tile pixel rows.
            pl.BlockSpec((None, C, rows_tile, _LANE),
                         lambda n, r: (n, 0, r, 0)),
            pl.BlockSpec((None, rows_tile, _LANE),
                         lambda n, r: (n, r, 0)),
        ],
        out_specs=(
            pl.BlockSpec((None, rows_tile, _LANE),
                         lambda n, r: (n, r, 0)),
            pl.BlockSpec((None, None, 1, _LANE),
                         lambda n, r: (n, r, 0, 0)),
            pl.BlockSpec((None, None, 1, _LANE),
                         lambda n, r: (n, r, 0, 0)),
        ),
        compiler_params=pltpu.CompilerParams(
            dimension_semantics=("parallel", "parallel"),
            vmem_limit_bytes=40 * 1024 * 1024),
        cost_estimate=cost,
    )(logits4, labels3)

    return loss.reshape(-1), jnp.sum(hsum), jnp.sum(hcnt)


def ohem_ce_loss(logits_nchw, labels_nhw, *, thresh, n_min, ignore_lb=255):
    """Forward pass of OhemCELoss. logits: (N,C,H,W), labels: (N,H,W) int."""
    N, C, H, W = logits_nchw.shape
    P = N * H * W
    assert 0 <= n_min < P, "n_min must be < number of pixels"

    thresh_val = float(-math.log(float(thresh)))   # static, like the buffer

    loss, sum_hard, n_hard = per_pixel_ce_ohem(
        logits_nchw, labels_nhw, thresh_val=thresh_val, ignore_lb=ignore_lb)

    # sorted_loss[n_min] > thresh  <=>  count(loss > thresh) > n_min, so the
    # branch decision needs no sort/top_k at all.
    def hard_mean(_):
        return sum_hard / n_hard.astype(jnp.float32)   # n_hard >= n_min+1 >= 1

    def topk_mean(_):
        # TODO(synk): replace with a fused histogram selection for very large
        # P (lax.top_k with k ~ n_min dominates end-to-end at ~10^7 pixels).
        top_vals = jax.lax.top_k(loss, n_min)[0]
        return jnp.mean(top_vals)

    return jax.lax.cond(n_hard > jnp.int32(n_min), hard_mean, topk_mean, None)


def _ref_ohem(logits, labels, thresh, n_min, ignore_lb=255):
    """Pure-JAX reference (same math as nn.CrossEntropyLoss + OHEM select)."""
    logp = jax.nn.log_softmax(logits.astype(jnp.float32), axis=1)
    safe = jnp.where(labels == ignore_lb, 0, labels)
    picked = jnp.take_along_axis(logp, safe[:, None], axis=1)[:, 0]
    loss = jnp.where(labels == ignore_lb, 0.0, -picked).reshape(-1)
    tv = -jnp.log(jnp.float32(thresh))
    ls = jnp.sort(loss)[::-1]
    mean_hard = jnp.sum(jnp.where(loss > tv, loss, 0.0)) / jnp.maximum(
        jnp.sum(loss > tv), 1).astype(jnp.float32)
    return jnp.where(ls[n_min] > tv, mean_hard, jnp.mean(ls[:n_min]))


if __name__ == "__main__":
    key = jax.random.PRNGKey(0)

    # --- Case 1: lane-aligned shape (no padding, no masking path). ---------
    N, C, H, W = 2, 4, 16, 16
    n_min = (N * H * W) // 8          # 64
    k_logits, k_labels, k_ignore, key = jax.random.split(key, 4)
    logits = jax.random.normal(k_logits, (N, C, H, W), dtype=jnp.float32)
    labels = jax.random.randint(k_labels, (N, H, W), 0, C, dtype=jnp.int32)
    ignore_mask = jax.random.uniform(k_ignore, (N, H, W)) < 0.05
    labels = jnp.where(ignore_mask, jnp.int32(255), labels)

    for thresh in (0.7, 0.05):        # exercise both OHEM branches
        out = ohem_ce_loss(logits, labels, thresh=thresh, n_min=n_min,
                           ignore_lb=255)
        out = jax.block_until_ready(out)
        assert out.shape == () and bool(jnp.isfinite(out))
        ref = _ref_ohem(logits, labels, thresh, n_min)
        assert jnp.abs(out - ref) < 1e-4, (thresh, out, ref)

    # --- Case 2: ragged shape (exercises padding + in-kernel tail mask). ---
    N2, C2, H2, W2 = 1, 5, 9, 21
    n_min2 = (N2 * H2 * W2) // 8
    k_logits, k_labels, k_ignore, key = jax.random.split(key, 4)
    logits2 = jax.random.normal(k_logits, (N2, C2, H2, W2), dtype=jnp.float32)
    labels2 = jax.random.randint(k_labels, (N2, H2, W2), 0, C2,
                                 dtype=jnp.int32)
    ignore_mask2 = jax.random.uniform(k_ignore, (N2, H2, W2)) < 0.05
    labels2 = jnp.where(ignore_mask2, jnp.int32(255), labels2)

    for thresh in (0.7, 0.02):
        out = ohem_ce_loss(logits2, labels2, thresh=thresh, n_min=n_min2,
                           ignore_lb=255)
        out = jax.block_until_ready(out)
        assert out.shape == () and bool(jnp.isfinite(out))
        ref = _ref_ohem(logits2, labels2, thresh, n_min2)
        assert jnp.abs(out - ref) < 1e-4, (thresh, out, ref)

    print("KERNEL_OK")
</pallas_src>

<mosaic_0001>
module attributes {stable_mosaic.version = 11 : i64} {
  func.func @_ce_kernel(%arg0: i32, %arg1: i32, %arg2: memref<1x4x2x128xf32, #tpu.memory_space<vmem>>, %arg3: memref<1x2x128xi32, #tpu.memory_space<vmem>>, %arg4: memref<1x2x128xf32, #tpu.memory_space<vmem>>, %arg5: memref<1x1x1x128xf32, #tpu.memory_space<vmem>>, %arg6: memref<1x1x1x128xi32, #tpu.memory_space<vmem>>) attributes {dimension_semantics = [#tpu.dimension_semantics<parallel>, #tpu.dimension_semantics<parallel>], iteration_bounds = array<i64: 2, 1>, scalar_prefetch = 0 : i64, scratch_operands = 0 : i64, tpu.core_type = #tpu.core_type<tc>, window_params = [{transform_indices = @transform_0, window_bounds = array<i64: 1, 4, 2, 128>}, {transform_indices = @transform_1, window_bounds = array<i64: 1, 2, 128>}, {transform_indices = @transform_2, window_bounds = array<i64: 1, 2, 128>}, {transform_indices = @transform_3, window_bounds = array<i64: 1, 1, 1, 128>}, {transform_indices = @transform_4, window_bounds = array<i64: 1, 1, 1, 128>}]} {
    %c0 = arith.constant 0 : index
    %c0_0 = arith.constant 0 : index
    %c0_1 = arith.constant 0 : index
    %0 = vector.load %arg3[%c0, %c0_0, %c0_1] : memref<1x2x128xi32, #tpu.memory_space<vmem>>, vector<1x2x128xi32>
    %1 = vector.shape_cast %0 : vector<1x2x128xi32> to vector<2x128xi32>
    %c0_2 = arith.constant 0 : index
    %c0_3 = arith.constant 0 : index
    %c0_4 = arith.constant 0 : index
    %c0_5 = arith.constant 0 : index
    %2 = vector.load %arg2[%c0_2, %c0_3, %c0_4, %c0_5] : memref<1x4x2x128xf32, #tpu.memory_space<vmem>>, vector<1x1x2x128xf32>
    %3 = vector.shape_cast %2 : vector<1x1x2x128xf32> to vector<2x128xf32>
    %c0_6 = arith.constant 0 : index
    %c1 = arith.constant 1 : index
    %c0_7 = arith.constant 0 : index
    %c0_8 = arith.constant 0 : index
    %4 = vector.load %arg2[%c0_6, %c1, %c0_7, %c0_8] : memref<1x4x2x128xf32, #tpu.memory_space<vmem>>, vector<1x1x2x128xf32>
    %5 = vector.shape_cast %4 : vector<1x1x2x128xf32> to vector<2x128xf32>
    %6 = arith.maximumf %3, %5 : vector<2x128xf32>
    %c0_9 = arith.constant 0 : index
    %c2 = arith.constant 2 : index
    %c0_10 = arith.constant 0 : index
    %c0_11 = arith.constant 0 : index
    %7 = vector.load %arg2[%c0_9, %c2, %c0_10, %c0_11] : memref<1x4x2x128xf32, #tpu.memory_space<vmem>>, vector<1x1x2x128xf32>
    %8 = vector.shape_cast %7 : vector<1x1x2x128xf32> to vector<2x128xf32>
    %9 = arith.maximumf %6, %8 : vector<2x128xf32>
    %c0_12 = arith.constant 0 : index
    %c3 = arith.constant 3 : index
    %c0_13 = arith.constant 0 : index
    %c0_14 = arith.constant 0 : index
    %10 = vector.load %arg2[%c0_12, %c3, %c0_13, %c0_14] : memref<1x4x2x128xf32, #tpu.memory_space<vmem>>, vector<1x1x2x128xf32>
    %11 = vector.shape_cast %10 : vector<1x1x2x128xf32> to vector<2x128xf32>
    %12 = arith.maximumf %9, %11 : vector<2x128xf32>
    %cst = arith.constant 0.000000e+00 : f32
    %13 = vector.broadcast %cst : f32 to vector<2x128xf32>
    %cst_15 = arith.constant 0.000000e+00 : f32
    %14 = vector.broadcast %cst_15 : f32 to vector<2x128xf32>
    %c0_16 = arith.constant 0 : index
    %c0_17 = arith.constant 0 : index
    %c0_18 = arith.constant 0 : index
    %c0_19 = arith.constant 0 : index
    %15 = vector.load %arg2[%c0_16, %c0_17, %c0_18, %c0_19] : memref<1x4x2x128xf32, #tpu.memory_space<vmem>>, vector<1x1x2x128xf32>
    %16 = vector.shape_cast %15 : vector<1x1x2x128xf32> to vector<2x128xf32>
    %17 = arith.subf %16, %12 : vector<2x128xf32>
    %18 = math.exp %17 : vector<2x128xf32>
    %19 = arith.addf %13, %18 : vector<2x128xf32>
    %c0_i32 = arith.constant 0 : i32
    %20 = vector.broadcast %c0_i32 : i32 to vector<2x128xi32>
    %21 = arith.cmpi eq, %1, %20 : vector<2x128xi32>
    %22 = arith.select %21, %16, %14 : vector<2x128xi1>, vector<2x128xf32>
    %c0_20 = arith.constant 0 : index
    %c1_21 = arith.constant 1 : index
    %c0_22 = arith.constant 0 : index
    %c0_23 = arith.constant 0 : index
    %23 = vector.load %arg2[%c0_20, %c1_21, %c0_22, %c0_23] : memref<1x4x2x128xf32, #tpu.memory_space<vmem>>, vector<1x1x2x128xf32>
    %24 = vector.shape_cast %23 : vector<1x1x2x128xf32> to vector<2x128xf32>
    %25 = arith.subf %24, %12 : vector<2x128xf32>
    %26 = math.exp %25 : vector<2x128xf32>
    %27 = arith.addf %19, %26 : vector<2x128xf32>
    %c1_i32 = arith.constant 1 : i32
    %28 = vector.broadcast %c1_i32 : i32 to vector<2x128xi32>
    %29 = arith.cmpi eq, %1, %28 : vector<2x128xi32>
    %30 = arith.select %29, %24, %22 : vector<2x128xi1>, vector<2x128xf32>
    %c0_24 = arith.constant 0 : index
    %c2_25 = arith.constant 2 : index
    %c0_26 = arith.constant 0 : index
    %c0_27 = arith.constant 0 : index
    %31 = vector.load %arg2[%c0_24, %c2_25, %c0_26, %c0_27] : memref<1x4x2x128xf32, #tpu.memory_space<vmem>>, vector<1x1x2x128xf32>
    %32 = vector.shape_cast %31 : vector<1x1x2x128xf32> to vector<2x128xf32>
    %33 = arith.subf %32, %12 : vector<2x128xf32>
    %34 = math.exp %33 : vector<2x128xf32>
    %35 = arith.addf %27, %34 : vector<2x128xf32>
    %c2_i32 = arith.constant 2 : i32
    %36 = vector.broadcast %c2_i32 : i32 to vector<2x128xi32>
    %37 = arith.cmpi eq, %1, %36 : vector<2x128xi32>
    %38 = arith.select %37, %32, %30 : vector<2x128xi1>, vector<2x128xf32>
    %c0_28 = arith.constant 0 : index
    %c3_29 = arith.constant 3 : index
    %c0_30 = arith.constant 0 : index
    %c0_31 = arith.constant 0 : index
    %39 = vector.load %arg2[%c0_28, %c3_29, %c0_30, %c0_31] : memref<1x4x2x128xf32, #tpu.memory_space<vmem>>, vector<1x1x2x128xf32>
    %40 = vector.shape_cast %39 : vector<1x1x2x128xf32> to vector<2x128xf32>
    %41 = arith.subf %40, %12 : vector<2x128xf32>
    %42 = math.exp %41 : vector<2x128xf32>
    %43 = arith.addf %35, %42 : vector<2x128xf32>
    %c3_i32 = arith.constant 3 : i32
    %44 = vector.broadcast %c3_i32 : i32 to vector<2x128xi32>
    %45 = arith.cmpi eq, %1, %44 : vector<2x128xi32>
    %46 = arith.select %45, %40, %38 : vector<2x128xi1>, vector<2x128xf32>
    %47 = math.log %43 : vector<2x128xf32>
    %48 = arith.addf %47, %12 : vector<2x128xf32>
    %c255_i32 = arith.constant 255 : i32
    %49 = vector.broadcast %c255_i32 : i32 to vector<2x128xi32>
    %50 = arith.cmpi ne, %1, %49 : vector<2x128xi32>
    %51 = arith.subf %48, %46 : vector<2x128xf32>
    %cst_32 = arith.constant 0.000000e+00 : f32
    %52 = vector.broadcast %cst_32 : f32 to vector<2x128xf32>
    %53 = arith.select %50, %51, %52 : vector<2x128xi1>, vector<2x128xf32>
    %c0_33 = arith.constant 0 : index
    %c0_34 = arith.constant 0 : index
    %c0_35 = arith.constant 0 : index
    %54 = vector.load %arg4[%c0_33, %c0_34, %c0_35] : memref<1x2x128xf32, #tpu.memory_space<vmem>>, vector<1x2x128xf32>
    %55 = vector.shape_cast %54 : vector<1x2x128xf32> to vector<2x128xf32>
    %56 = vector.shape_cast %53 : vector<2x128xf32> to vector<1x2x128xf32>
    tpu.vector_store %arg4[%c0_33, %c0_34, %c0_35], %56 {strides = array<i32>} : memref<1x2x128xf32, #tpu.memory_space<vmem>>, vector<1x2x128xf32>,
    %cst_36 = arith.constant 0.356674939 : f32
    %57 = vector.broadcast %cst_36 : f32 to vector<2x128xf32>
    %58 = arith.cmpf ogt, %53, %57 : vector<2x128xf32>
    %cst_37 = arith.constant 0.000000e+00 : f32
    %59 = vector.broadcast %cst_37 : f32 to vector<2x128xf32>
    %60 = arith.select %58, %53, %59 : vector<2x128xi1>, vector<2x128xf32>
    %cst_38 = arith.constant dense<0.000000e+00> : vector<128xf32>
    %61 = vector.multi_reduction <add>, %60, %cst_38 [0] : vector<2x128xf32> to vector<128xf32>
    %62 = vector.shape_cast %61 : vector<128xf32> to vector<1x128xf32>
    %c0_39 = arith.constant 0 : index
    %c0_40 = arith.constant 0 : index
    %c0_41 = arith.constant 0 : index
    %c0_42 = arith.constant 0 : index
    %63 = vector.load %arg5[%c0_39, %c0_40, %c0_41, %c0_42] : memref<1x1x1x128xf32, #tpu.memory_space<vmem>>, vector<1x1x1x128xf32>
    %64 = vector.shape_cast %63 : vector<1x1x1x128xf32> to vector<1x128xf32>
    %65 = vector.shape_cast %62 : vector<1x128xf32> to vector<1x1x1x128xf32>
    tpu.vector_store %arg5[%c0_39, %c0_40, %c0_41, %c0_42], %65 {strides = array<i32>} : memref<1x1x1x128xf32, #tpu.memory_space<vmem>>, vector<1x1x1x128xf32>,
    %66 = arith.extui %58 : vector<2x128xi1> to vector<2x128xi32>
    %cst_43 = arith.constant dense<0> : vector<128xi32>
    %67 = vector.multi_reduction <add>, %66, %cst_43 [0] : vector<2x128xi32> to vector<128xi32>
    %68 = vector.shape_cast %67 : vector<128xi32> to vector<1x128xi32>
    %c0_44 = arith.constant 0 : index
    %c0_45 = arith.constant 0 : index
    %c0_46 = arith.constant 0 : index
    %c0_47 = arith.constant 0 : index
    %69 = vector.load %arg6[%c0_44, %c0_45, %c0_46, %c0_47] : memref<1x1x1x128xi32, #tpu.memory_space<vmem>>, vector<1x1x1x128xi32>
    %70 = vector.shape_cast %69 : vector<1x1x1x128xi32> to vector<1x128xi32>
    %71 = vector.shape_cast %68 : vector<1x128xi32> to vector<1x1x1x128xi32>
    tpu.vector_store %arg6[%c0_44, %c0_45, %c0_46, %c0_47], %71 {strides = array<i32>} : memref<1x1x1x128xi32, #tpu.memory_space<vmem>>, vector<1x1x1x128xi32>,
    return
  }
  func.func @transform_0(%arg0: i32, %arg1: i32) -> (i32, i32, i32, i32) {
    %c0_i32 = arith.constant 0 : i32
    %c0_i32_0 = arith.constant 0 : i32
    %c0_i32_1 = arith.constant 0 : i32
    return %arg0, %c0_i32, %arg1, %c0_i32_0 : i32, i32, i32, i32
  }
  func.func @transform_1(%arg0: i32, %arg1: i32) -> (i32, i32, i32) {
    %c0_i32 = arith.constant 0 : i32
    %c0_i32_0 = arith.constant 0 : i32
    return %arg0, %arg1, %c0_i32 : i32, i32, i32
  }
  func.func @transform_2(%arg0: i32, %arg1: i32) -> (i32, i32, i32) {
    %c0_i32 = arith.constant 0 : i32
    %c0_i32_0 = arith.constant 0 : i32
    return %arg0, %arg1, %c0_i32 : i32, i32, i32
  }
  func.func @transform_3(%arg0: i32, %arg1: i32) -> (i32, i32, i32, i32) {
    %c0_i32 = arith.constant 0 : i32
    %c0_i32_0 = arith.constant 0 : i32
    %c0_i32_1 = arith.constant 0 : i32
    return %arg0, %arg1, %c0_i32, %c0_i32_0 : i32, i32, i32, i32
  }
  func.func @transform_4(%arg0: i32, %arg1: i32) -> (i32, i32, i32, i32) {
    %c0_i32 = arith.constant 0 : i32
    %c0_i32_0 = arith.constant 0 : i32
    %c0_i32_1 = arith.constant 0 : i32
    return %arg0, %arg1, %c0_i32, %c0_i32_0 : i32, i32, i32, i32
  }
}

</mosaic_0001>

<bundles_post_ra>
// kernel: tpu_custom_call.1
= control target key start
LH: loop header
LB: loop body
LE: loop exit
PB: predicated region body
PF: predicated region fallthrough
CT: control target
= control target key end

     0   :  { %s1213_s0 = inlined_call_operand.hbm [shape: f32[2,4,2,128], index: 0, kind: input, shape index: {}]   ;;  %s1214_s1 = inlined_call_operand.hbm [shape: s32[2,2,128], index: 1, kind: input, shape index: {}]   ;;  %s1215_s2 = inlined_call_operand.hbm [shape: f32[2,2,128], index: 2, kind: output, shape index: {0}]   ;;  %s1216_s3 = inlined_call_operand.hbm [shape: f32[2,1,1,128], index: 3, kind: output, shape index: {1}]   ;;  %s1217_s4 = inlined_call_operand.hbm [shape: s32[2,1,1,128], index: 4, kind: output, shape index: {2}]  }
   0x1   :  { %1221 = sst [smem:[#allocation15_spill]] %s1213_s0 }
   0x2   :  { %10 = vsyncpa [#allocation3], 0 }
   0x3   :  { %12 = vsyncpa [#allocation3 + $0x1], 0 }
   0x4   :  { %13 = vsyncpa [#allocation6], 0 }
   0x5   :  { %15 = vsyncpa [#allocation6 + $0x1], 0 }
   0x6   :  { %16 = vsyncpa [#allocation4], 0 }
   0x7   :  { %18 = vsyncpa [#allocation4 + $0x1], 0 }
   0x8   :  { %19 = vsyncpa [#allocation9], 0 }
   0x9   :  { %21 = vsyncpa [#allocation9 + $0x1], 0  ;;  %s920_s15 = smov 0   ;;  %s922_s16 = smov 0  }
   0xa   :  { %s924_s17 = smov 0   ;;  %s926_s18 = smov 0  }
   0xb   :  { %s928_s19 = smov 0   ;;  %s930_s20 = smov 0  }
   0xc LB: > { %s951_s21 = sadd.s32 4294967295, %s885_s20   ;;  %s1219_s22 = sadd.s32 4294967294, %s885_s20   ;;  %s885_s20 = sphi %s930_s20, %s27_s20   ;;  %s881_s19 = sphi %s928_s19, %s1240_s19   ;;  %s877_s18 = sphi %s926_s18, %s1239_s18   ;;  %s873_s17 = sphi %s924_s17, %s1238_s17   ;;  %s869_s16 = sphi %s922_s16, %s1237_s16   ;;  %s865_s15 = sphi %s920_s15, %s1236_s15  }
   0xd   : > { %s39_s23 = sadd.s32 1, %s881_s19  ;;  %s48_s24 = sadd.s32 1, %s873_s17 }
   0xe   : > { %p41_p0 = scmp.ge.s32.totalorder %s39_s23, 2  ;;  %p55_p1 = scmp.ne.s32.totalorder %s873_s17, %s869_s16 }
   0xf   : > { %p56_p2 = scmp.eq.s32.totalorder %s885_s20, 0  ;;  %p61_p3 = scmp.ne.s32.totalorder %s869_s16, %s865_s15 }
  0x10   : > { %s1242_s23 = smov (%p41_p0, %s39_s23), 0  ;;  %p62_p5 = scmp.eq.s32.totalorder %s951_s21, 0 }
  0x11   : > { %p963_p4 = por %p56_p2, %p55_p1  ;;  %s43_s26 = ssub.s32 %s881_s19, %s1242_s23 }
  0x12   : > { %p115_p6 = scmp.eq.s32.totalorder %s951_s21, 1  ;;  %p46_p7 = scmp.eq.s32.totalorder %s43_s26, 0 }
  0x13   : > { %p971_p8 = por %p62_p5, %p61_p3  ;;  %p121_p10 = scmp.eq.s32.totalorder %s1219_s22, 1 }
  0x14   : > { %p975_p9 = por %p115_p6, %p55_p1  ;;  %p616_p13 = scmp.lt.s32.totalorder %s885_s20, 2 }
  0x15   : > { %s1223_s27 = scalar_select %p971_p8, 1, 0 }
  0x16   : > { %s1224_s28 = scalar_select %p975_p9, 1, 0 }
  0x17   : > { %s982_s29 = scalar_select %p46_p7, %s873_s17, %s48_s24  }
  0x18   : > { %p984_p11 = por %p121_p10, %p61_p3  ;;  %s991_s5 = sand.u32 1, %s873_s17  }
  0x19   : > { %s570_s6 = sshll.u32 %s991_s5, 3  ;;  %s588_s7 = sshll.u32 %s881_s19, 7 }
  0x1a   : > { %s1225_s30 = scalar_select %p984_p11, 1, 0 }
  0x1b   : > { %s1226_s0 = sld [smem:[#allocation15_spill]]  ;;  %s201_s11 = scalar_lea.vmem [#allocation2], %s570_s6 }
  0x1c   : > { %s209_s12 = sshll.u32 %s201_s11, 4  ;;  %p1004_p0 = pnand %p616_p13, %p963_p4  ;;  %s1000_s12 = int_to_ptr.vmem [resolvable:$true] %s209_s12 }
  0x1d   : > { %s198_s14 = scalar_lea.sflag [#allocation3], %s991_s5 }
  0x1e   : > { %p681_p3 = pneg %p1004_p0 }
  0x21   : > { %s998_s10 = scalar_lea.hbm %s1226_s0, %s588_s7  ;;  %s684_s25 = scalar_lea.hbm %s1226_s0, 256 }
  0x22   : > { %s679_s24 = scalar_lea.hbm %s998_s10, 128  ;;  %p685_p4 = scmp.lt.u32.totalorder %s998_s10, %s1226_s0 }
  0x23   : > { %p680_p2 = scmp.ne.s32.totalorder %s998_s10, %s679_s24  ;;  %p686_p7 = scmp.lt.u32.totalorder %s684_s25, %s679_s24 }
  0x24   : > { %p688_p13 = scmp.lt.u32.totalorder %s679_s24, %s998_s10 }
  0x25   : > { %p682_p5 = pnand %p681_p3, %p680_p2  ;;  %p687_p10 = por %p686_p7, %p685_p4 }
  0x27   : > { %p683_p6 = pneg %p682_p5  ;;  %p689_p12 = por %p688_p13, %p687_p10 }
  0x29   : > { %p690_p1 = pnand %p689_p12, %p683_p6 }
  0x2b   : > { %693 = shalt.err (!%p690_p1)
}
  0x2c   : > { %s694_s9 = scalar_lea.vmem %s1000_s12, 128  ;;  %s887_s11 = smov [#allocation2]  }
  0x2d   : > { %p695_p2 = scmp.ne.s32.totalorder %s1000_s12, %s694_s9  ;;  %s699_s26 = sshll.u32 %s887_s11, 4  ;;  %s700_s26 = int_to_ptr.vmem [resolvable:$false] %s699_s26 }
  0x2e   : > { %s701_s6 = scalar_lea.vmem %s700_s26, 256  ;;  %p702_p9 = scmp.lt.s32.totalorder %s1000_s12, %s700_s26 }
  0x2f   : > { %p697_p5 = pnand %p695_p2, %p681_p3  ;;  %p703_p4 = scmp.lt.s32.totalorder %s701_s6, %s694_s9 }
  0x31   : > { %p698_p11 = pneg %p697_p5  ;;  %p704_p7 = por %p703_p4, %p702_p9 }
  0x33   : > { %p705_p10 = pnand %p704_p7, %p698_p11 }
  0x35   : > { %708 = shalt.err (!%p705_p10)
}
  0x36   : > { %s888_s24 = smov 32   ;;  %s889_s25 = smov 2  }
  0x37   : > { %602 = dma.hbm_to_vmem [thread:$0]  (!%p1004_p0), %s998_s10, 128, %s1000_s12, %s198_s14, %s888_s24, %s888_s24, %s889_s25  }
  0x38   : > { %p236_p12 = scmp.lt.s32.totalorder %s885_s20, 3  ;;  %s573_s7 = sshll.u32 %s991_s5, 1 }
  0x39   : > { %s574_s8 = sshll.u32 %s881_s19, 5  ;;  %p1228_p9 = scmp.ge.s32.totalorder %s885_s20, 1 }
  0x3a   : > { %s1049_s6 = scalar_lea.hbm %s1214_s1, %s574_s8  ;;  %s223_s22 = scalar_lea.vmem [#allocation5], %s573_s7 }
  0x3b   : > { %p1042_p11 = pnand %p1228_p9, %p236_p12  ;;  %s231_s0 = sshll.u32 %s223_s22, 4  ;;  %s232_s0 = int_to_ptr.vmem [resolvable:$true] %s231_s0 }
  0x3c   : > { %s220_s10 = scalar_lea.sflag [#allocation6], %s991_s5  ;;  %s709_s12 = scalar_lea.hbm %s1049_s6, 32 }
  0x3d   : > { %s1229_s9 = scalar_select %p1042_p11, 1, 0 }
  0x3e   : > { %p710_p1 = scmp.ne.s32.totalorder %s1049_s6, %s709_s12  ;;  %s714_s25 = scalar_lea.hbm %s1214_s1, 64 }
  0x3f   : > { %p715_p2 = scmp.lt.u32.totalorder %s1049_s6, %s1214_s1  ;;  %p716_p5 = scmp.lt.u32.totalorder %s714_s25, %s709_s12 }
  0x40   : > { %p712_p6 = pnand %p710_p1, %p681_p3  ;;  %p718_p7 = scmp.lt.u32.totalorder %s709_s12, %s1049_s6 }
  0x41   : > { %p717_p4 = por %p716_p5, %p715_p2 }
  0x42   : > { %p713_p13 = pneg %p712_p6 }
  0x43   : > { %p719_p10 = por %p718_p7, %p717_p4 }
  0x45   : > { %p720_p12 = pnand %p719_p10, %p713_p13 }
  0x47   : > { %723 = shalt.err (!%p720_p12)
}
  0x48   : > { %s724_s22 = scalar_lea.vmem %s232_s0, 32  ;;  %s890_s5 = smov [#allocation5]  }
  0x49   : > { %p725_p9 = scmp.ne.s32.totalorder %s232_s0, %s724_s22  ;;  %s729_s7 = sshll.u32 %s890_s5, 4  ;;  %s730_s7 = int_to_ptr.vmem [resolvable:$false] %s729_s7 }
  0x4a   : > { %s731_s26 = scalar_lea.vmem %s730_s7, 64  ;;  %p732_p8 = scmp.lt.s32.totalorder %s232_s0, %s730_s7 }
  0x4b   : > { %p727_p1 = pnand %p725_p9, %p681_p3  ;;  %p733_p11 = scmp.lt.s32.totalorder %s731_s26, %s724_s22 }
  0x4d   : > { %p728_p6 = pneg %p727_p1  ;;  %p734_p2 = por %p733_p11, %p732_p8 }
  0x4f   : > { %p735_p5 = pnand %p734_p2, %p728_p6 }
  0x51   : > { %738 = shalt.err (!%p735_p5)
}
  0x52   : > { %605 = dma.hbm_to_vmem [thread:$0]  (!%p1004_p0), %s1049_s6, 32, %s232_s0, %s220_s10  }
  0x53   : > { %p1230_p13 = scmp.ne.s32.totalorder %s1229_s9, 0 }
  0x54   : > { %s1074_s12 = sand.u32 (!%p1230_p13), 1, %s869_s16   ;;  %p1231_p3 = scmp.ne.s32.totalorder (!%p1230_p13), %s1223_s27, 0 }
  0x55   : > { %240 = sbr.rel (%p1230_p13) target bundleno = 207 (0xcf), region = 28  ;;  %s576_s14 = sshll.u32 (!%p1230_p13), %s1074_s12, 3 }
  0x56   : > { %s243_s24 = scalar_lea.sflag (!%p1230_p13), [#allocation3], %s1074_s12  ;;  %s246_s25 = scalar_lea.vmem (!%p1230_p13), [#allocation2], %s576_s14 }
  0x5c   : > { %848 = dma.done.wait (%p1231_p3), %s243_s24, 128  }
  0x5d   : > { %850 = vsyncadd (%p1231_p3), %s243_s24, 4294967168  ;;  %s577_s0 = sshll.u32 %s1074_s12, 1  ;;  %s252_s13 = scalar_lea.sflag [#allocation6], %s1074_s12 }
  0x5e   : > { %s255_s9 = scalar_lea.vmem [#allocation5], %s577_s0 }
  0x5f   : > { %852 = dma.done.wait (%p1231_p3), %s252_s13, 32  }
  0x60   : > { %854 = vsyncadd (%p1231_p3), %s252_s13, 4294967264  ;;  %v294_v0 = vld [vmem:[%s246_s25] sm:$0x3]  ;;  %v579_v1 = vld [vmem:[%s246_s25 + $0x2] sm:$0x3]  ;;  %s280_s27 = scalar_lea.vmem [#allocation7], %s577_s0 }
  0x61   : > { %v297_v2 = vmax.f32 %v294_v0, %v579_v1  ;;  %v580_v3 = vld [vmem:[%s246_s25 + $0x4] sm:$0x3]  ;;  %v581_v4 = vld [vmem:[%s246_s25 + $0x6] sm:$0x3]  ;;  %v293_v21 = vld [vmem:[%s255_s9] sm:$0x3] }
  0x62   : > { %vm308_vm0 = vcmp.eq.s32.totalorder %v293_v21, 0  ;;  %vm314_vm1 = vcmp.eq.s32.totalorder %v293_v21, 1  ;;  %vm320_vm2 = vcmp.eq.s32.totalorder %v293_v21, 2  ;;  %vm326_vm3 = vcmp.eq.s32.totalorder %v293_v21, 3  ;;  %s378_s6 = sshll.u32 %s280_s27, 4  ;;  %s583_s10 = sshll.u32 %s877_s18, 5  ;;  %s1093_s6 = int_to_ptr.vmem [resolvable:$true] %s378_s6 }
  0x63   : > { %v300_v5 = vmax.f32 %v297_v2, %v580_v3  ;;  %v309_v23 = vsel %vm308_vm0, %v294_v0, 0.0  ;;  %vm331_vm4 = vcmp.ne.s32.totalorder %v293_v21, 255  ;;  %s1098_s22 = scalar_lea.hbm %s1215_s2, %s583_s10  ;;  %vm337_vm5 = vcmask 1041408   ;;  %s356_s5 = scalar_lea.sflag [#allocation4], %s1074_s12 }
  0x64   : > { %v315_v24 = vsel %vm314_vm1, %v579_v1, %v309_v23  ;;  %v891_v33 = vmov 0   ;;  %s739_s7 = scalar_lea.vmem %s1093_s6, 32  ;;  %p1232_p0 = scmp.ne.s32.totalorder %s1224_s28, 0 }
  0x65   : > { %v303_v6 = vmax.f32 %v300_v5, %v581_v4  ;;  %v321_v25 = vsel %vm320_vm2, %v580_v3, %v315_v24  ;;  %p740_p8 = scmp.ne.s32.totalorder %s1093_s6, %s739_s7  ;;  %s892_s26 = smov [#allocation7]  }
  0x66   : > { %v327_v28 = vsel %vm326_vm3, %v581_v4, %v321_v25  ;;  %s743_s14 = sshll.u32 %s892_s26, 4  ;;  %s744_s14 = int_to_ptr.vmem [resolvable:$false] %s743_s14 }
  0x67   : > { %v304_v7 = vsub.f32 %v294_v0, %v303_v6  ;;  %v310_v8 = vsub.f32 %v579_v1, %v303_v6  ;;  %v316_v9 = vsub.f32 %v580_v3, %v303_v6  ;;  %v322_v10 = vsub.f32 %v581_v4, %v303_v6  ;;  %p741_p11 = pnand %p740_p8, %p1232_p0  ;;  %s745_s24 = scalar_lea.vmem %s744_s14, 64 }
  0x68   : > { %p746_p7 = scmp.lt.s32.totalorder %s1093_s6, %s744_s14  ;;  %p747_p10 = scmp.lt.s32.totalorder %s745_s24, %s739_s7 }
  0x69   : > { %v305_v11 = vmul.f32 1.442695, %v304_v7  ;;  %v311_v12 = vmul.f32 1.442695, %v310_v8  ;;  %v317_v13 = vmul.f32 1.442695, %v316_v9  ;;  %p742_p4 = pneg %p741_p11 }
  0x6a   : > { %v323_v14 = vmul.f32 1.442695, %v322_v10  ;;  %p748_p12 = por %p747_p10, %p746_p7 }
  0x6b   : > { %669 = vpow2.f32 %v305_v11 }
  0x6c   : > { %671 = vpow2.f32 %v311_v12  ;;  %p749_p9 = pnand %p748_p12, %p742_p4 }
  0x6d   : > { %673 = vpow2.f32 %v317_v13 }
  0x6e   : > { %675 = vpow2.f32 %v323_v14 }
  0x75   : > { %v670_v15 = vpop.eup %669 }
  0x76   : > { %v672_v16 = vpop.eup %671 }
  0x77   : > { %v674_v17 = vpop.eup %673  ;;  %v313_v18 = vadd.f32 %v672_v16, %v670_v15 }
  0x78   : > { %v676_v19 = vpop.eup %675 }
  0x79   : > { %v319_v20 = vadd.f32 %v674_v17, %v313_v18 }
  0x7b   : > { %v325_v22 = vadd.f32 %v676_v19, %v319_v20 }
  0x7d   : > { %677 = vlog2.f32 %v325_v22 }
  0x87   : > { %v678_v26 = vpop.eup %677 }
  0x88   : > { %v329_v27 = vmul.f32 0.6931472, %v678_v26 }
  0x8a   : > { %v330_v29 = vadd.f32 %v329_v27, %v303_v6 }
  0x8c   : > { %v332_v30 = vsub.f32 %v330_v29, %v327_v28 }
  0x8e   : > { %v333_v31 = vsel %vm331_vm4, %v332_v30, 0.0 }
  0x8f   : > { %vm335_vm6 = vcmp.gt.f32.partialorder %v333_v31, 0.35667494  ;;  %334 = vst [vmem:[%s280_s27] sm:$0x3] %v333_v31 }
  0x90   : > { %v336_v32 = vsel %vm335_vm6, %v333_v31, 0.0  ;;  %v346_v34 = vsel %vm335_vm6, 1, %v891_v33 }
  0x91   : > { %752 = shalt.err (!%p749_p9)
}
  0x92   : > { %s753_s25 = scalar_lea.hbm %s1098_s22, 32  ;;  %s757_s9 = scalar_lea.hbm %s1215_s2, 64 }
  0x93   : > { %p754_p1 = scmp.ne.s32.totalorder %s1098_s22, %s753_s25  ;;  %p758_p5 = scmp.lt.u32.totalorder %s1098_s22, %s1215_s2 }
  0x94   : > { %p759_p13 = scmp.lt.u32.totalorder %s757_s9, %s753_s25  ;;  %p761_p8 = scmp.lt.u32.totalorder %s753_s25, %s1098_s22 }
  0x95   : > { %p755_p6 = pnand %p754_p1, %p1232_p0 }
  0x96   : > { %p760_p3 = por %p759_p13, %p758_p5 }
  0x97   : > { %p756_p2 = pneg %p755_p6 }
  0x98   : > { %p762_p11 = por %p761_p8, %p760_p3 }
  0x9a   : > { %p763_p4 = pnand %p762_p11, %p756_p2 }
  0x9c   : > { %766 = shalt.err (!%p763_p4)
}
  0x9d   : > { %593 = dma.vmem_to_hbm [thread:$0]  (%p1232_p0), %s1093_s6, 32, %s1098_s22, %s356_s5   ;;  %v338_v35 = vsel %vm337_vm5, %v336_v32, 0.0  ;;  %v347_v36 = vsel %vm337_vm5, %v346_v34, 0 }
  0x9e   : > { %v339_v37 = vrot.slane %v338_v35, 4  ;;  %v348_v38 = vrot.slane %v347_v36, 4  ;;  %s286_s8 = scalar_lea.vmem [#allocation8], %s1074_s12  ;;  %s360_s7 = sand.u32 1, %s951_s21  }
  0x9f   : > { %s392_s11 = sshll.u32 %s286_s8, 4  ;;  %s584_s26 = sshll.u32 %s877_s18, 4  ;;  %s1128_s11 = int_to_ptr.vmem [resolvable:$true] %s392_s11 }
  0xa0   : > { %v340_v39 = vadd.f32 %v339_v37, %v338_v35  ;;  %v349_v40 = vadd.s32 %v348_v38, %v347_v36  ;;  %s292_s6 = scalar_lea.vmem [#allocation10], %s1074_s12  ;;  %s1133_s24 = scalar_lea.hbm %s1216_s3, %s584_s26 }
  0xa1   : > { %s406_s22 = sshll.u32 %s292_s6, 4  ;;  %s1140_s25 = scalar_lea.hbm %s1217_s4, %s584_s26  ;;  %s1135_s22 = int_to_ptr.vmem [resolvable:$true] %s406_s22 }
  0xa2   : > { %v341_v41 = vrot.slane %v340_v39, 2  ;;  %v350_v42 = vrot.slane %v349_v40, 2  ;;  %s1142_s12 = scalar_lea.sflag [#allocation9], %s360_s7  ;;  %s767_s0 = scalar_lea.vmem %s1128_s11, 16 }
  0xa3   : > { %p768_p7 = scmp.ne.s32.totalorder %s1128_s11, %s767_s0  ;;  %s893_s13 = smov [#allocation8]  }
  0xa4   : > { %v342_v43 = vadd.f32 %v341_v41, %v340_v39  ;;  %v351_v44 = vadd.s32 %v350_v42, %v349_v40  ;;  %s771_s9 = sshll.u32 %s893_s13, 4  ;;  %s772_s9 = int_to_ptr.vmem [resolvable:$false] %s771_s9 }
  0xa5   : > { %p769_p10 = pnand %p768_p7, %p1232_p0  ;;  %s773_s27 = scalar_lea.vmem %s772_s9, 32 }
  0xa6   : > { %v343_v45 = vrot.slane %v342_v43, 1  ;;  %v352_v46 = vrot.slane %v351_v44, 1  ;;  %p774_p9 = scmp.lt.s32.totalorder %s1128_s11, %s772_s9  ;;  %p775_p1 = scmp.lt.s32.totalorder %s773_s27, %s767_s0 }
  0xa7   : > { %p770_p12 = pneg %p769_p10 }
  0xa8   : > { %v344_v47 = vadd.f32 %v343_v45, %v342_v43  ;;  %v353_v48 = vadd.s32 %v352_v46, %v351_v44  ;;  %p776_p6 = por %p775_p1, %p774_p9 }
  0xaa   : > { %345 = vst [vmem:[%s286_s8] sm:$0x1] %v344_v47  ;;  %354 = vst [vmem:[%s292_s6] sm:$0x1] %v353_v48  ;;  %p777_p2 = pnand %p776_p6, %p770_p12 }
  0xac   : > { %780 = shalt.err (!%p777_p2)
}
  0xad   : > { %s781_s10 = scalar_lea.hbm %s1133_s24, 16  ;;  %s785_s26 = scalar_lea.hbm %s1216_s3, 32 }
  0xae   : > { %p782_p5 = scmp.ne.s32.totalorder %s1133_s24, %s781_s10  ;;  %p786_p8 = scmp.lt.u32.totalorder %s1133_s24, %s1216_s3 }
  0xaf   : > { %p787_p11 = scmp.lt.u32.totalorder %s785_s26, %s781_s10  ;;  %p789_p7 = scmp.lt.u32.totalorder %s781_s10, %s1133_s24 }
  0xb0   : > { %p783_p13 = pnand %p782_p5, %p1232_p0 }
  0xb1   : > { %p788_p4 = por %p787_p11, %p786_p8 }
  0xb2   : > { %p784_p3 = pneg %p783_p13 }
  0xb3   : > { %p790_p10 = por %p789_p7, %p788_p4 }
  0xb5   : > { %p791_p12 = pnand %p790_p10, %p784_p3 }
  0xb7   : > { %794 = shalt.err (!%p791_p12)
}
  0xb8   : > { %594 = dma.vmem_to_hbm [thread:$0]  (%p1232_p0), %s1128_s11, 16, %s1133_s24, %s1142_s12  }
  0xb9   : > { %s795_s14 = scalar_lea.vmem %s1135_s22, 16  ;;  %s894_s18 = smov [#allocation10]  }
  0xba   : > { %p796_p9 = scmp.ne.s32.totalorder %s1135_s22, %s795_s14  ;;  %s799_s21 = sshll.u32 %s894_s18, 4  ;;  %s800_s21 = int_to_ptr.vmem [resolvable:$false] %s799_s21 }
  0xbb   : > { %s801_s0 = scalar_lea.vmem %s800_s21, 32  ;;  %p802_p2 = scmp.lt.s32.totalorder %s1135_s22, %s800_s21 }
  0xbc   : > { %p797_p1 = pnand %p796_p9, %p1232_p0  ;;  %p803_p5 = scmp.lt.s32.totalorder %s801_s0, %s795_s14 }
  0xbe   : > { %p798_p6 = pneg %p797_p1  ;;  %p804_p13 = por %p803_p5, %p802_p2 }
  0xc0   : > { %p805_p3 = pnand %p804_p13, %p798_p6 }
  0xc2   : > { %808 = shalt.err (!%p805_p3)
}
  0xc3   : > { %s809_s11 = scalar_lea.hbm %s1140_s25, 16  ;;  %s813_s9 = scalar_lea.hbm %s1217_s4, 32 }
  0xc4   : > { %p810_p8 = scmp.ne.s32.totalorder %s1140_s25, %s809_s11  ;;  %p814_p7 = scmp.lt.u32.totalorder %s1140_s25, %s1217_s4 }
  0xc5   : > { %p815_p10 = scmp.lt.u32.totalorder %s813_s9, %s809_s11  ;;  %p817_p9 = scmp.lt.u32.totalorder %s809_s11, %s1140_s25 }
  0xc6   : > { %p811_p11 = pnand %p810_p8, %p1232_p0 }
  0xc7   : > { %p816_p12 = por %p815_p10, %p814_p7 }
  0xc8   : > { %p812_p4 = pneg %p811_p11 }
  0xc9   : > { %p818_p1 = por %p817_p9, %p816_p12 }
  0xcb   : > { %p819_p6 = pnand %p818_p1, %p812_p4 }
  0xcd   : > { %822 = shalt.err (!%p819_p6)
}
  0xce   : > { %595 = dma.vmem_to_hbm [thread:$0]  (%p1232_p0), %s1135_s22, 16, %s1140_s25, %s1142_s12  }
  0xcf PF: > { %s418_s8 = sand.u32 1, %s865_s15   ;;  %p1233_p2 = scmp.ne.s32.totalorder %s1225_s30, 0 }
  0xd0   : > { %p1234_p5 = scmp.ge.s32.totalorder %s885_s20, 2  ;;  %s419_s7 = scalar_lea.sflag [#allocation4], %s418_s8 }
  0xd2   : > { %p607_p13 = pnand %p1234_p5, %p1233_p2 }
  0xd4   : > { %856 = dma.done.wait (!%p607_p13), %s419_s7, 32  }
  0xd5   : > { %858 = vsyncadd (!%p607_p13), %s419_s7, 4294967264  ;;  %s1235_s26 = sadd.s32 4294967294, %s885_s20  }
  0xd6   : > { %s427_s6 = sand.u32 1, %s1235_s26  }
  0xd7   : > { %s428_s5 = scalar_lea.sflag [#allocation9], %s427_s6 }
  0xd8   : > { %860 = dma.done.wait (!%p607_p13), %s428_s5, 32  }
  0xd9   : > { %862 = vsyncadd (!%p607_p13), %s428_s5, 4294967264  ;;  %s27_s20 = sadd.s32 1, %s885_s20   ;;  %s1236_s15 = smov %s869_s16 }
  0xda   : > { %p24_p0 = scmp.ge.s32.totalorder %s27_s20, 4   ;;  %s1237_s16 = smov %s873_s17 }
  0xdb   : > { %s1238_s17 = smov %s982_s29  ;;  %s1239_s18 = smov %s881_s19 }
  0xdc   : > { %s1240_s19 = smov %s1242_s23  ;;  %26 = sbr.rel (!%p24_p0) target bundleno = 12 (0xc), region = 121 }
  0xe3   :  { %440 = vsyncpa [#allocation3], 1 }
  0xe4   :  { %442 = vsyncpa [#allocation3 + $0x1], 1 }
  0xe5   :  { %443 = vsyncpa [#allocation6], 1 }
  0xe6   :  { %445 = vsyncpa [#allocation6 + $0x1], 1 }
  0xe7   :  { %446 = vsyncpa [#allocation4], 1 }
  0xe8   :  { %448 = vsyncpa [#allocation4 + $0x1], 1 }
  0xe9   :  { %449 = vsyncpa [#allocation9], 1 }
  0xea   :  { %451 = vsyncpa [#allocation9 + $0x1], 1 }

</bundles_post_ra>
